<compile_context>
chip_gen: v7x
topology: tpu7x:2x2x1
jax: 0.10.0
libtpu: 0.0.40
codegen_flags: <defaults>
</compile_context>

<pallas_src>
import jax
import jax.numpy as jnp
from jax import lax
from jax.experimental import pallas as pl
from jax.experimental.pallas import tpu as pltpu


def _grad_map(s):
    """s: (NB, H, W) channel-summed images -> |gx| + |gy| of same shape.

    gx / gy are 3-tap box filters along W / H with zero padding, implemented
    as XLU rolls with the wrapped edge column / row masked to zero.
    """
    nb, h, w = s.shape
    row = lax.broadcasted_iota(jnp.int32, (nb, h, w), 1)
    col = lax.broadcasted_iota(jnp.int32, (nb, h, w), 2)

    # Horizontal 3-tap: s[w-1] + s[w] + s[w+1], zeros outside the image.
    left = jnp.where(col == 0, 0.0, pltpu.roll(s, shift=1, axis=2))
    right = jnp.where(col == w - 1, 0.0, pltpu.roll(s, shift=w - 1, axis=2))
    gx = left + s + right

    # Vertical 3-tap: s[h-1] + s[h] + s[h+1], zeros outside the image.
    up = jnp.where(row == 0, 0.0, pltpu.roll(s, shift=1, axis=1))
    down = jnp.where(row == h - 1, 0.0, pltpu.roll(s, shift=h - 1, axis=1))
    gy = up + s + down

    return jnp.abs(gx) + jnp.abs(gy)


def _boundary_loss_kernel(fake_ref, real_ref, partial_ref):
    fake = fake_ref[...].astype(jnp.float32)  # (NB, C, H, W)
    real = real_ref[...].astype(jnp.float32)  # (NB, C, H, W)

    g_fake = _grad_map(jnp.sum(fake, axis=1))  # (NB, H, W)
    g_real = _grad_map(jnp.sum(real, axis=1))  # (NB, H, W)

    diff = g_fake - g_real
    # One partial sum per grid step; final reduce happens in the wrapper.
    partial_ref[0, 0] = jnp.sum(diff * diff)


def boundary_loss(fake_images, real_images, lambda_boundary=1.0):
    """Pallas equivalent of BoundaryLoss.forward. Inputs: (N, C, H, W) f32."""
    assert fake_images.shape == real_images.shape
    n, c, h, w = fake_images.shape

    # Batch samples per grid step, bounded by a conservative per-block VMEM
    # budget (2 MiB per input block -> <= 8 MiB double-buffered inputs),
    # which fits v7x's 64 MiB VMEM as well as v5e/v6e.
    bytes_per_sample = c * h * w * 4
    vmem_budget_per_block = 2 * 1024 * 1024
    nb = max(1, min(n, vmem_budget_per_block // max(bytes_per_sample, 1)))

    num_blocks = pl.cdiv(n, nb)
    n_padded = num_blocks * nb
    if n_padded != n:
        # Zero-padded samples have zero gradient maps for both fake and real,
        # so they contribute exactly 0 to the sum of squared differences.
        pad = ((0, n_padded - n), (0, 0), (0, 0), (0, 0))
        fake_images = jnp.pad(fake_images, pad)
        real_images = jnp.pad(real_images, pad)

    partials = pl.pallas_call(
        _boundary_loss_kernel,
        out_shape=jax.ShapeDtypeStruct((num_blocks, 1), jnp.float32),
        grid_spec=pltpu.PrefetchScalarGridSpec(
            num_scalar_prefetch=0,
            grid=(num_blocks,),
            in_specs=[
                pl.BlockSpec((nb, c, h, w), lambda i: (i, 0, 0, 0)),
                pl.BlockSpec((nb, c, h, w), lambda i: (i, 0, 0, 0)),
            ],
            out_specs=pl.BlockSpec(
                (1, 1), lambda i: (i, 0), memory_space=pltpu.SMEM
            ),
        ),
        compiler_params=pltpu.CompilerParams(
            dimension_semantics=("parallel",),  # independent per-block outputs
            vmem_limit_bytes=32 * 1024 * 1024,
        ),
    )(fake_images, real_images)

    ssd = jnp.sum(partials)
    # mse_loss 'mean': gradient maps have shape (N, 1, H, W) -> N*H*W elements.
    return lambda_boundary * ssd / jnp.float32(n * h * w)


def _reference_loss(fake, real, lam=1.0):
    """Pure-JAX reference matching the PyTorch forward."""

    def grads(x):
        s = jnp.sum(x, axis=1)  # (N, H, W) channel sum
        sp_w = jnp.pad(s, ((0, 0), (0, 0), (1, 1)))
        gx = sp_w[:, :, :-2] + sp_w[:, :, 1:-1] + sp_w[:, :, 2:]
        sp_h = jnp.pad(s, ((0, 0), (1, 1), (0, 0)))
        gy = sp_h[:, :-2, :] + sp_h[:, 1:-1, :] + sp_h[:, 2:, :]
        return jnp.abs(gx) + jnp.abs(gy)

    d = grads(fake) - grads(real)
    return lam * jnp.mean(d * d)


if __name__ == "__main__":
    key = jax.random.PRNGKey(0)
    k1, k2 = jax.random.split(key)
    N, C, H, W = 2, 4, 16, 16
    fake = jax.random.normal(k1, (N, C, H, W), dtype=jnp.float32)
    real = jax.random.normal(k2, (N, C, H, W), dtype=jnp.float32)

    loss = boundary_loss(fake, real, lambda_boundary=1.0)
    loss = jax.block_until_ready(loss)

    ref = _reference_loss(fake, real, 1.0)
    assert jnp.allclose(loss, ref, rtol=1e-5, atol=1e-5), (loss, ref)

    print("KERNEL_OK")
</pallas_src>

<mosaic_0001>
module attributes {stable_mosaic.version = 11 : i64} {
  func.func @_boundary_loss_kernel(%arg0: i32, %arg1: memref<2x4x16x16xf32, #tpu.memory_space<vmem>>, %arg2: memref<2x4x16x16xf32, #tpu.memory_space<vmem>>, %arg3: memref<1x1xf32, #tpu.memory_space<smem>>) attributes {dimension_semantics = [#tpu.dimension_semantics<parallel>], iteration_bounds = array<i64: 1>, scalar_prefetch = 0 : i64, scratch_operands = 0 : i64, tpu.core_type = #tpu.core_type<tc>, window_params = [{transform_indices = @transform_0, window_bounds = array<i64: 2, 4, 16, 16>}, {transform_indices = @transform_1, window_bounds = array<i64: 2, 4, 16, 16>}, {transform_indices = @transform_2, window_bounds = array<i64: 1, 1>}]} {
    %c0 = arith.constant 0 : index
    %c0_0 = arith.constant 0 : index
    %c0_1 = arith.constant 0 : index
    %c0_2 = arith.constant 0 : index
    %0 = vector.load %arg1[%c0, %c0_0, %c0_1, %c0_2] : memref<2x4x16x16xf32, #tpu.memory_space<vmem>>, vector<2x4x16x16xf32>
    %c0_3 = arith.constant 0 : index
    %c0_4 = arith.constant 0 : index
    %c0_5 = arith.constant 0 : index
    %c0_6 = arith.constant 0 : index
    %1 = vector.load %arg2[%c0_3, %c0_4, %c0_5, %c0_6] : memref<2x4x16x16xf32, #tpu.memory_space<vmem>>, vector<2x4x16x16xf32>
    %cst = arith.constant dense<0.000000e+00> : vector<2x16x16xf32>
    %2 = vector.multi_reduction <add>, %0, %cst [1] : vector<2x4x16x16xf32> to vector<2x16x16xf32>
    %3 = tpu.iota {dimensions = array<i32: 1>} : vector<2x16x16xi32>
    %4 = tpu.iota {dimensions = array<i32: 2>} : vector<2x16x16xi32>
    %c0_i32 = arith.constant 0 : i32
    %5 = vector.broadcast %c0_i32 : i32 to vector<2x16x16xi32>
    %6 = arith.cmpi eq, %4, %5 : vector<2x16x16xi32>
    %c1_i32 = arith.constant 1 : i32
    %7 = tpu.dynamic_rotate %2 by %c1_i32 dim 2 : vector<2x16x16xf32>, i32 -> vector<2x16x16xf32>
    %cst_7 = arith.constant 0.000000e+00 : f32
    %8 = vector.broadcast %cst_7 : f32 to vector<2x16x16xf32>
    %9 = arith.select %6, %8, %7 : vector<2x16x16xi1>, vector<2x16x16xf32>
    %c15_i32 = arith.constant 15 : i32
    %10 = vector.broadcast %c15_i32 : i32 to vector<2x16x16xi32>
    %11 = arith.cmpi eq, %4, %10 : vector<2x16x16xi32>
    %c15_i32_8 = arith.constant 15 : i32
    %12 = tpu.dynamic_rotate %2 by %c15_i32_8 dim 2 : vector<2x16x16xf32>, i32 -> vector<2x16x16xf32>
    %cst_9 = arith.constant 0.000000e+00 : f32
    %13 = vector.broadcast %cst_9 : f32 to vector<2x16x16xf32>
    %14 = arith.select %11, %13, %12 : vector<2x16x16xi1>, vector<2x16x16xf32>
    %15 = arith.addf %9, %2 : vector<2x16x16xf32>
    %16 = arith.addf %15, %14 : vector<2x16x16xf32>
    %c0_i32_10 = arith.constant 0 : i32
    %17 = vector.broadcast %c0_i32_10 : i32 to vector<2x16x16xi32>
    %18 = arith.cmpi eq, %3, %17 : vector<2x16x16xi32>
    %c1_i32_11 = arith.constant 1 : i32
    %19 = tpu.dynamic_rotate %2 by %c1_i32_11 dim 1 : vector<2x16x16xf32>, i32 -> vector<2x16x16xf32>
    %cst_12 = arith.constant 0.000000e+00 : f32
    %20 = vector.broadcast %cst_12 : f32 to vector<2x16x16xf32>
    %21 = arith.select %18, %20, %19 : vector<2x16x16xi1>, vector<2x16x16xf32>
    %c15_i32_13 = arith.constant 15 : i32
    %22 = vector.broadcast %c15_i32_13 : i32 to vector<2x16x16xi32>
    %23 = arith.cmpi eq, %3, %22 : vector<2x16x16xi32>
    %c15_i32_14 = arith.constant 15 : i32
    %24 = tpu.dynamic_rotate %2 by %c15_i32_14 dim 1 : vector<2x16x16xf32>, i32 -> vector<2x16x16xf32>
    %cst_15 = arith.constant 0.000000e+00 : f32
    %25 = vector.broadcast %cst_15 : f32 to vector<2x16x16xf32>
    %26 = arith.select %23, %25, %24 : vector<2x16x16xi1>, vector<2x16x16xf32>
    %27 = arith.addf %21, %2 : vector<2x16x16xf32>
    %28 = arith.addf %27, %26 : vector<2x16x16xf32>
    %29 = math.absf %16 : vector<2x16x16xf32>
    %30 = math.absf %28 : vector<2x16x16xf32>
    %31 = arith.addf %29, %30 : vector<2x16x16xf32>
    %cst_16 = arith.constant dense<0.000000e+00> : vector<2x16x16xf32>
    %32 = vector.multi_reduction <add>, %1, %cst_16 [1] : vector<2x4x16x16xf32> to vector<2x16x16xf32>
    %33 = tpu.iota {dimensions = array<i32: 1>} : vector<2x16x16xi32>
    %34 = tpu.iota {dimensions = array<i32: 2>} : vector<2x16x16xi32>
    %c0_i32_17 = arith.constant 0 : i32
    %35 = vector.broadcast %c0_i32_17 : i32 to vector<2x16x16xi32>
    %36 = arith.cmpi eq, %34, %35 : vector<2x16x16xi32>
    %c1_i32_18 = arith.constant 1 : i32
    %37 = tpu.dynamic_rotate %32 by %c1_i32_18 dim 2 : vector<2x16x16xf32>, i32 -> vector<2x16x16xf32>
    %cst_19 = arith.constant 0.000000e+00 : f32
    %38 = vector.broadcast %cst_19 : f32 to vector<2x16x16xf32>
    %39 = arith.select %36, %38, %37 : vector<2x16x16xi1>, vector<2x16x16xf32>
    %c15_i32_20 = arith.constant 15 : i32
    %40 = vector.broadcast %c15_i32_20 : i32 to vector<2x16x16xi32>
    %41 = arith.cmpi eq, %34, %40 : vector<2x16x16xi32>
    %c15_i32_21 = arith.constant 15 : i32
    %42 = tpu.dynamic_rotate %32 by %c15_i32_21 dim 2 : vector<2x16x16xf32>, i32 -> vector<2x16x16xf32>
    %cst_22 = arith.constant 0.000000e+00 : f32
    %43 = vector.broadcast %cst_22 : f32 to vector<2x16x16xf32>
    %44 = arith.select %41, %43, %42 : vector<2x16x16xi1>, vector<2x16x16xf32>
    %45 = arith.addf %39, %32 : vector<2x16x16xf32>
    %46 = arith.addf %45, %44 : vector<2x16x16xf32>
    %c0_i32_23 = arith.constant 0 : i32
    %47 = vector.broadcast %c0_i32_23 : i32 to vector<2x16x16xi32>
    %48 = arith.cmpi eq, %33, %47 : vector<2x16x16xi32>
    %c1_i32_24 = arith.constant 1 : i32
    %49 = tpu.dynamic_rotate %32 by %c1_i32_24 dim 1 : vector<2x16x16xf32>, i32 -> vector<2x16x16xf32>
    %cst_25 = arith.constant 0.000000e+00 : f32
    %50 = vector.broadcast %cst_25 : f32 to vector<2x16x16xf32>
    %51 = arith.select %48, %50, %49 : vector<2x16x16xi1>, vector<2x16x16xf32>
    %c15_i32_26 = arith.constant 15 : i32
    %52 = vector.broadcast %c15_i32_26 : i32 to vector<2x16x16xi32>
    %53 = arith.cmpi eq, %33, %52 : vector<2x16x16xi32>
    %c15_i32_27 = arith.constant 15 : i32
    %54 = tpu.dynamic_rotate %32 by %c15_i32_27 dim 1 : vector<2x16x16xf32>, i32 -> vector<2x16x16xf32>
    %cst_28 = arith.constant 0.000000e+00 : f32
    %55 = vector.broadcast %cst_28 : f32 to vector<2x16x16xf32>
    %56 = arith.select %53, %55, %54 : vector<2x16x16xi1>, vector<2x16x16xf32>
    %57 = arith.addf %51, %32 : vector<2x16x16xf32>
    %58 = arith.addf %57, %56 : vector<2x16x16xf32>
    %59 = math.absf %46 : vector<2x16x16xf32>
    %60 = math.absf %58 : vector<2x16x16xf32>
    %61 = arith.addf %59, %60 : vector<2x16x16xf32>
    %62 = arith.subf %31, %61 : vector<2x16x16xf32>
    %63 = arith.mulf %62, %62 : vector<2x16x16xf32>
    %64 = vector.shape_cast %63 : vector<2x16x16xf32> to vector<1x2x16x16xf32>
    %cst_29 = arith.constant dense<0.000000e+00> : vector<1xf32>
    %65 = vector.multi_reduction <add>, %64, %cst_29 [1, 2, 3] : vector<1x2x16x16xf32> to vector<1xf32>
    %66 = vector.shape_cast %65 : vector<1xf32> to vector<1x1x1x1xf32>
    %67 = vector.extract %66[0, 0, 0, 0] : f32 from vector<1x1x1x1xf32>
    %c0_30 = arith.constant 0 : index
    %c0_31 = arith.constant 0 : index
    %68 = memref.load %arg3[%c0_30, %c0_31] : memref<1x1xf32, #tpu.memory_space<smem>>
    memref.store %67, %arg3[%c0_30, %c0_31] : memref<1x1xf32, #tpu.memory_space<smem>>
    return
  }
  func.func @transform_0(%arg0: i32) -> (i32, i32, i32, i32) {
    %c0_i32 = arith.constant 0 : i32
    %c0_i32_0 = arith.constant 0 : i32
    %c0_i32_1 = arith.constant 0 : i32
    %c0_i32_2 = arith.constant 0 : i32
    return %arg0, %c0_i32, %c0_i32_0, %c0_i32_1 : i32, i32, i32, i32
  }
  func.func @transform_1(%arg0: i32) -> (i32, i32, i32, i32) {
    %c0_i32 = arith.constant 0 : i32
    %c0_i32_0 = arith.constant 0 : i32
    %c0_i32_1 = arith.constant 0 : i32
    %c0_i32_2 = arith.constant 0 : i32
    return %arg0, %c0_i32, %c0_i32_0, %c0_i32_1 : i32, i32, i32, i32
  }
  func.func @transform_2(%arg0: i32) -> (i32, i32) {
    %c0_i32 = arith.constant 0 : i32
    %c0_i32_0 = arith.constant 0 : i32
    return %arg0, %c0_i32 : i32, i32
  }
}

</mosaic_0001>

<bundles_post_ra>
// kernel: tpu_custom_call.1
= control target key start
LH: loop header
LB: loop body
LE: loop exit
PB: predicated region body
PF: predicated region fallthrough
CT: control target
= control target key end

     0   :  { %7 = vsyncpa [#allocation3], 0  ;;  %s779_s0 = inlined_call_operand.hbm [shape: f32[2,4,16,16], index: 0, kind: input, shape index: {}]   ;;  %s780_s1 = inlined_call_operand.hbm [shape: f32[2,4,16,16], index: 1, kind: input, shape index: {}]   ;;  %s781_s2 = inlined_call_operand.hbm [shape: f32[1,1], index: 2, kind: output, shape index: {}]  }
   0x1   :  { %8 = vsyncpa [#allocation6], 0 }
   0x2   :  { %9 = vsyncpa [#allocation4], 0  ;;  %s478_s9 = smov [#allocation2]   ;;  %s418_s13 = scalar_lea.hbm %s779_s0, 2048 }
   0x3   :  { %s15_s10 = sshll.u32 %s478_s9, 4  ;;  %p419_p0 = scmp.ne.s32.totalorder %s779_s0, %s418_s13  ;;  %s16_s10 = int_to_ptr.vmem [resolvable:$true] %s15_s10 }
   0x4   :  { %p422_p1 = scmp.lt.u32.totalorder %s418_s13, %s779_s0 }
   0x6   :  { %p424_p2 = pnand %p422_p1, %p419_p0 }
   0x8   :  { %427 = shalt.err (!%p424_p2)
}
   0x9   :  { %s428_s18 = scalar_lea.vmem %s16_s10, 2048  ;;  %p433_p4 = scmp.lt.s32.totalorder %s16_s10, %s16_s10 }
   0xa   :  { %p429_p3 = scmp.ne.s32.totalorder %s16_s10, %s428_s18  ;;  %p434_p5 = scmp.lt.s32.totalorder %s428_s18, %s428_s18 }
   0xc   :  { %p435_p6 = por %p434_p5, %p433_p4 }
   0xe   :  { %p436_p7 = pnand %p435_p6, %p429_p3 }
  0x10   :  { %439 = shalt.err (!%p436_p7)
}
  0x11   :  { %s479_s19 = smov 128   ;;  %s480_s20 = smov 8  }
  0x12   :  { %21 = dma.hbm_to_vmem [thread:$0]  %s779_s0, 2048, %s16_s10, [#allocation3], %s479_s19, %s479_s19, %s480_s20  }
  0x13   :  { %s481_s23 = smov [#allocation5]   ;;  %s440_s27 = scalar_lea.hbm %s780_s1, 2048 }
  0x14   :  { %s27_s24 = sshll.u32 %s481_s23, 4  ;;  %p441_p8 = scmp.ne.s32.totalorder %s780_s1, %s440_s27  ;;  %s28_s24 = int_to_ptr.vmem [resolvable:$true] %s27_s24 }
  0x15   :  { %p444_p9 = scmp.lt.u32.totalorder %s440_s27, %s780_s1 }
  0x17   :  { %p446_p10 = pnand %p444_p9, %p441_p8 }
  0x19   :  { %449 = shalt.err (!%p446_p10)
}
  0x1a   :  { %s450_s4 = scalar_lea.vmem %s28_s24, 2048  ;;  %p455_p12 = scmp.lt.s32.totalorder %s28_s24, %s28_s24 }
  0x1b   :  { %p451_p11 = scmp.ne.s32.totalorder %s28_s24, %s450_s4  ;;  %p456_p13 = scmp.lt.s32.totalorder %s450_s4, %s450_s4 }
  0x1d   :  { %p457_p0 = por %p456_p13, %p455_p12 }
  0x1f   :  { %p458_p1 = pnand %p457_p0, %p451_p11 }
  0x21   :  { %461 = shalt.err (!%p458_p1)
}
  0x22   :  { %33 = dma.hbm_to_vmem [thread:$0]  %s780_s1, 2048, %s28_s24, [#allocation6], %s479_s19, %s479_s19, %s480_s20  }
  0x23   :  { %472 = dma.done.wait [#allocation3], 2048  }
  0x24   :  { %473 = vsyncadd [#allocation3], 4294965248 }
  0x25   :  { %474 = dma.done.wait [#allocation6], 2048  }
  0x26   :  { %475 = vsyncadd [#allocation6], 4294965248  ;;  %vm72_vm0 = vcmask 130048   ;;  %v40_v0 = vld [vmem:[#allocation2] sm:$0xff]  ;;  %v42_v1 = vld [vmem:[#allocation2 + $0x10] sm:$0xff]  ;;  %s482_s1 = smov 16  }
  0x27   :  { %v44_v2 = vld [vmem:[#allocation2 + $0x20] sm:$0xff]  ;;  %v46_v3 = vld [vmem:[#allocation2 + $0x30] sm:$0xff]  ;;  %v73_v4 = vsel %vm72_vm0, %v40_v0, 0.0  ;;  %v74_v5 = vsel %vm72_vm0, %v42_v1, 0.0  ;;  %v41_v15 = vld [vmem:[#allocation2 + $0x8] sm:$0xff]  ;;  %vm107_vm1 = vcmask 1047680  }
  0x28   :  { %v76_v6 = vsel %vm72_vm0, %v44_v2, 0.0  ;;  %v56_v7 = vld [vmem:[#allocation5] sm:$0xff]  ;;  %v58_v8 = vld [vmem:[#allocation5 + $0x10] sm:$0xff]  ;;  %v75_v9 = vadd.f32 %v74_v5, %v73_v4  ;;  %v78_v10 = vsel %vm72_vm0, %v46_v3, 0.0  ;;  %v43_v19 = vld [vmem:[#allocation2 + $0x18] sm:$0xff]  ;;  %v80_v22 = vsel %vm72_vm0, %v41_v15, 0.0 }
  0x29   :  { %v60_v11 = vld [vmem:[#allocation5 + $0x20] sm:$0xff]  ;;  %v62_v12 = vld [vmem:[#allocation5 + $0x30] sm:$0xff]  ;;  %v227_v13 = vsel %vm72_vm0, %v56_v7, 0.0  ;;  %v228_v14 = vsel %vm72_vm0, %v58_v8, 0.0  ;;  %v45_v20 = vld [vmem:[#allocation2 + $0x28] sm:$0xff]  ;;  %v81_v24 = vsel %vm72_vm0, %v43_v19, 0.0 }
  0x2a   :  { %v229_v16 = vadd.f32 %v228_v14, %v227_v13  ;;  %v230_v17 = vsel %vm72_vm0, %v60_v11, 0.0  ;;  %v232_v18 = vsel %vm72_vm0, %v62_v12, 0.0  ;;  %v47_v21 = vld [vmem:[#allocation2 + $0x38] sm:$0xff]  ;;  %v77_v23 = vadd.f32 %v76_v6, %v75_v9  ;;  %v57_v27 = vld [vmem:[#allocation5 + $0x8] sm:$0xff]  ;;  %v48_v35 = vld [vmem:[#allocation2 + $0x40] sm:$0xff]  ;;  %s483_s6 = smov 113  }
  0x2b   :  { %v83_v25 = vsel %vm72_vm0, %v45_v20, 0.0  ;;  %v85_v26 = vsel %vm72_vm0, %v47_v21, 0.0  ;;  %v59_v28 = vld [vmem:[#allocation5 + $0x18] sm:$0xff]  ;;  %v61_v29 = vld [vmem:[#allocation5 + $0x28] sm:$0xff]  ;;  %v82_v31 = vadd.f32 %v81_v24, %v80_v22  ;;  %v234_v33 = vsel %vm72_vm0, %v57_v27, 0.0  ;;  %v50_v36 = vld [vmem:[#allocation2 + $0x50] sm:$0xff] }
  0x2c   :  { %v231_v30 = vadd.f32 %v230_v17, %v229_v16  ;;  %v63_v32 = vld [vmem:[#allocation5 + $0x38] sm:$0xff]  ;;  %v235_v34 = vsel %vm72_vm0, %v59_v28, 0.0  ;;  %v539_v37 = vadd.f32 %v78_v10, %v77_v23  ;;  %v237_v39 = vsel %vm72_vm0, %v61_v29, 0.0  ;;  %v52_v41 = vld [vmem:[#allocation2 + $0x60] sm:$0xff]  ;;  %v54_v42 = vld [vmem:[#allocation2 + $0x70] sm:$0xff]  ;;  %s484_s7 = smov 127  }
  0x2d   :  { %v236_v38 = vadd.f32 %v235_v34, %v234_v33  ;;  %v239_v40 = vsel %vm72_vm0, %v63_v32, 0.0  ;;  %v64_v43 = vld [vmem:[#allocation5 + $0x40] sm:$0xff]  ;;  %v84_v45 = vadd.f32 %v83_v25, %v82_v31  ;;  %v87_v46 = vsel %vm72_vm0, %v48_v35, 0.0  ;;  %v66_v48 = vld [vmem:[#allocation5 + $0x50] sm:$0xff]  ;;  %v49_v55 = vld [vmem:[#allocation2 + $0x48] sm:$0xff]  ;;  %s462_s11 = scalar_lea.hbm %s781_s2, 16 }
  0x2e   :  { %v543_v44 = vadd.f32 %v232_v18, %v231_v30  ;;  %v88_v47 = vsel %vm72_vm0, %v50_v36, 0.0  ;;  %v68_v49 = vld [vmem:[#allocation5 + $0x60] sm:$0xff]  ;;  %v70_v50 = vld [vmem:[#allocation5 + $0x70] sm:$0xff]  ;;  %108 = vrot.lane.b32.xlu0 %v539_v37, %s482_s1  ;;  %v90_v53 = vsel %vm72_vm0, %v52_v41, 0.0  ;;  %v92_v54 = vsel %vm72_vm0, %v54_v42, 0.0  ;;  %v51_v56 = vld [vmem:[#allocation2 + $0x58] sm:$0xff]  ;;  %p463_p2 = scmp.ne.s32.totalorder %s781_s2, %s462_s11  ;;  %p466_p3 = scmp.lt.u32.totalorder %s462_s11, %s781_s2 }
  0x2f   :  { %v238_v51 = vadd.f32 %v237_v39, %v236_v38  ;;  %v89_v52 = vadd.f32 %v88_v47, %v87_v46  ;;  %v53_v57 = vld [vmem:[#allocation2 + $0x68] sm:$0xff]  ;;  %v553_v58 = vadd.f32 %v85_v26, %v84_v45  ;;  %v241_v59 = vsel %vm72_vm0, %v64_v43, 0.0  ;;  %v55_v2 = vld [vmem:[#allocation2 + $0x78] sm:$0xff] }
  0x30   :  { %255 = vrot.lane.b32.xlu1 %v543_v44, %s482_s1  ;;  %v242_v60 = vsel %vm72_vm0, %v66_v48, 0.0  ;;  %v244_v61 = vsel %vm72_vm0, %v68_v49, 0.0  ;;  %v65_v62 = vld [vmem:[#allocation5 + $0x48] sm:$0xff]  ;;  %v67_v3 = vld [vmem:[#allocation5 + $0x58] sm:$0xff]  ;;  %v246_v5 = vsel %vm72_vm0, %v70_v50, 0.0  ;;  %v94_v6 = vsel %vm72_vm0, %v49_v55, 0.0  ;;  %p468_p4 = pnand %p466_p3, %p463_p2 }
  0x31   :  { %v558_v63 = vadd.f32 %v239_v40, %v238_v51  ;;  %v91_v0 = vadd.f32 %v90_v53, %v89_v52  ;;  %v243_v1 = vadd.f32 %v242_v60, %v241_v59  ;;  %v69_v4 = vld [vmem:[#allocation5 + $0x68] sm:$0xff]  ;;  %v95_v7 = vsel %vm72_vm0, %v51_v56, 0.0  ;;  %v71_v12 = vld [vmem:[#allocation5 + $0x78] sm:$0xff] }
  0x32   :  { %v97_v8 = vsel %vm72_vm0, %v53_v57, 0.0  ;;  %111 = vrot.lane.b32.xlu0 %v553_v58, %s482_s1  ;;  %v96_v11 = vadd.f32 %v95_v7, %v94_v6  ;;  %v248_v13 = vsel %vm72_vm0, %v65_v62, 0.0  ;;  %v99_v14 = vsel %vm72_vm0, %v55_v2, 0.0 }
  0x33   :  { %v566_v9 = vadd.f32 %v92_v54, %v91_v0  ;;  %v245_v10 = vadd.f32 %v244_v61, %v243_v1  ;;  %v249_v15 = vsel %vm72_vm0, %v67_v3, 0.0  ;;  %v251_v16 = vsel %vm72_vm0, %v69_v4, 0.0 }
  0x34   :  { %258 = vrot.lane.b32.xlu1 %v558_v63, %s482_s1  ;;  %v98_v18 = vadd.f32 %v97_v8, %v96_v11  ;;  %v250_v19 = vadd.f32 %v249_v15, %v248_v13  ;;  %v253_v20 = vsel %vm72_vm0, %v71_v12, 0.0  ;;  %v101_v59 = vlaneseq }
  0x35   :  { %v574_v17 = vadd.f32 %v246_v5, %v245_v10  ;;  %v323_v61 = vrot.slane %v543_v44, 7  ;;  %v325_v62 = vrot.slane %v558_v63, 7  ;;  %v181_v0 = vrot.slane %v553_v58, 7 }
  0x36   :  { %114 = vrot.lane.b32.xlu0 %v566_v9, %s482_s1  ;;  %v579_v21 = vadd.f32 %v99_v14, %v98_v18  ;;  %v252_v22 = vadd.f32 %v251_v16, %v250_v19  ;;  %v629_v60 = vshrl.u32 %v101_v59, 7  ;;  %v179_v1 = vrot.slane %v539_v37, 7 }
  0x37   :  { %v196_v4 = vrot.slane %v553_v58, 1  ;;  %v194_v5 = vrot.slane %v539_v37, 1  ;;  %v335_v14 = vrot.slane %v543_v44, 1  ;;  %v337_v15 = vrot.slane %v558_v63, 1 }
  0x38   :  { %261 = vrot.lane.b32.xlu1 %v574_v17, %s482_s1  ;;  %v583_v23 = vadd.f32 %v253_v20, %v252_v22  ;;  %v636_v2 = vadd.s32 8, %v629_v60  ;;  %vm183_vm2 = vcmp.lt.s32.totalorder %v629_v60, 1  ;;  %vm198_vm3 = vcmp.lt.s32.totalorder %v629_v60, 7 }
  0x39   :  { %v329_v6 = vsel %vm183_vm2, %v325_v62, %v323_v61  ;;  %vm177_vm4 = vcmp.eq.s32.totalorder %v629_v60, 0  ;;  %v186_v7 = vsel %vm183_vm2, %v181_v0, %v179_v1  ;;  %v184_v8 = vsel %vm183_vm2, %v179_v1, %v181_v0 }
  0x3a   :  { %117 = vrot.lane.b32.xlu0 %v579_v21, %s482_s1  ;;  %vm193_vm5 = vcmp.eq.s32.totalorder %v636_v2, 15  ;;  %v201_v12 = vsel %vm198_vm3, %v196_v4, %v194_v5  ;;  %v331_v13 = vsel %vm177_vm4, 0.0, %v329_v6  ;;  %v188_v16 = vsel %vm177_vm4, 0.0, %v186_v7 }
  0x3b   :  { %v208_v18 = vadd.f32 %v184_v8, %v553_v58  ;;  %v659_v19 = vand.u32 127, %v101_v59  ;;  %v204_v20 = vsel %vm193_vm5, 0.0, %v201_v12  ;;  %v347_v22 = vadd.f32 %v331_v13, %v543_v44 }
  0x3c   :  { %264 = vrot.lane.b32.xlu1 %v583_v23, %s482_s1  ;;  %v336_v59 = vrot.slane %v574_v17, 1 }
  0x3d   :  { %vm106_vm6 = vcmp.eq.s32.totalorder %v659_v19, 0  ;;  %vm152_vm7 = vcmp.eq.s32.totalorder %v659_v19, 15 }
  0xa0   :  { %v109_v24 = vpop.permute.xlu0 %108 }
  0xa1   :  { %v110_v25 = vsel %vm107_vm1, %v109_v24, %v539_v37 }
  0xa2   :  { %v256_v26 = vpop.permute.xlu1 %255  ;;  %120 = vrot.lane.b32.xlu0 %v110_v25, %s482_s1 }
  0xa3   :  { %v257_v27 = vsel %vm107_vm1, %v256_v26, %v543_v44  ;;  %v339_v26 = vsel %vm198_vm3, %v335_v14, %v337_v15 }
  0xa4   :  { %v112_v28 = vpop.permute.xlu0 %111 }
  0xa5   :  { %v113_v29 = vsel %vm107_vm1, %v112_v28, %v553_v58  ;;  %v180_v28 = vrot.slane %v566_v9, 7 }
  0xa6   :  { %v259_v30 = vpop.permute.xlu1 %258  ;;  %267 = vrot.lane.b32.xlu0 %v257_v27, %s482_s1  ;;  %122 = vrot.lane.b32.xlu1 %v113_v29, %s482_s1  ;;  %v327_v27 = vsel %vm183_vm2, %v323_v61, %v325_v62  ;;  %v182_v29 = vrot.slane %v579_v21, 7  ;;  %v338_v61 = vrot.slane %v583_v23, 1 }
  0xa7   :  { %v260_v31 = vsel %vm107_vm1, %v259_v30, %v558_v63  ;;  %v207_v30 = vadd.f32 %v188_v16, %v539_v37 }
  0xa8   :  { %v115_v32 = vpop.permute.xlu0 %114  ;;  %v185_v8 = vsel %vm183_vm2, %v180_v28, %v182_v29  ;;  %v340_v16 = vsel %vm198_vm3, %v336_v59, %v338_v61 }
  0xa9   :  { %v116_v33 = vsel %vm107_vm1, %v115_v32, %v566_v9  ;;  %v324_v32 = vrot.slane %v574_v17, 7 }
  0xaa   :  { %v262_v34 = vpop.permute.xlu1 %261  ;;  %269 = vrot.lane.b32.xlu1 %v260_v31, %s482_s1  ;;  %124 = vrot.lane.b32.xlu0 %v116_v33, %s482_s1  ;;  %v341_v31 = vsel %vm198_vm3, %v337_v15, %v335_v14  ;;  %v326_v33 = vrot.slane %v583_v23, 7 }
  0xab   :  { %v263_v35 = vsel %vm107_vm1, %v262_v34, %v574_v17  ;;  %v199_v34 = vsel %vm198_vm3, %v194_v5, %v196_v4 }
  0xac   :  { %v118_v36 = vpop.permute.xlu0 %117 }
  0xad   :  { %v119_v38 = vsel %vm107_vm1, %v118_v36, %v579_v21  ;;  %v679_v36 = vadd.f32 %v347_v22, %v339_v26 }
  0xae   :  { %v265_v39 = vpop.permute.xlu1 %264  ;;  %271 = vrot.lane.b32.xlu1 %v263_v35, %s482_s1  ;;  %126 = vrot.lane.b32.xlu0 %v119_v38, %s482_s1  ;;  %v677_v35 = vadd.f32 %v208_v18, %v204_v20  ;;  %v348_v38 = vadd.f32 %v327_v27, %v558_v63 }
  0xaf   :  { %v266_v40 = vsel %vm107_vm1, %v265_v39, %v583_v23 }
  0xb2   :  { %273 = vrot.lane.b32.xlu1 %v266_v40, %s482_s1 }
 0x114   :  { %v121_v41 = vpop.permute.xlu0 %120 }
 0x115   :  { %v128_v42 = vsel %vm107_vm1, %v121_v41, %v539_v37  ;;  %v344_v41 = vsel %vm193_vm5, 0.0, %v341_v31 }
 0x116   :  { %136 = vrot.lane.b32.xlu0 %v128_v42, %s483_s6 }
 0x118   :  { %v123_v43 = vpop.permute.xlu1 %122  ;;  %v268_v45 = vpop.permute.xlu0 %267 }
 0x119   :  { %v129_v46 = vsel %vm107_vm1, %v123_v43, %v553_v58  ;;  %v275_v47 = vsel %vm107_vm1, %v268_v45, %v543_v44  ;;  %v688_v43 = vadd.f32 %v207_v30, %v199_v34  ;;  %v330_v45 = vsel %vm183_vm2, %v326_v33, %v324_v32 }
 0x11a   :  { %138 = vrot.lane.b32.xlu1 %v129_v46, %s483_s6  ;;  %283 = vrot.lane.b32.xlu0 %v275_v47, %s483_s6 }
 0x11c   :  { %v270_v48 = vpop.permute.xlu1 %269  ;;  %v125_v49 = vpop.permute.xlu0 %124 }
 0x11d   :  { %v276_v50 = vsel %vm107_vm1, %v270_v48, %v558_v63  ;;  %v130_v51 = vsel %vm107_vm1, %v125_v49, %v566_v9  ;;  %v195_v48 = vrot.slane %v566_v9, 1  ;;  %v197_v49 = vrot.slane %v579_v21, 1 }
 0x11e   :  { %285 = vrot.lane.b32.xlu1 %v276_v50, %s483_s6  ;;  %140 = vrot.lane.b32.xlu0 %v130_v51, %s483_s6 }
 0x11f   :  { %v200_v6 = vsel %vm198_vm3, %v195_v48, %v197_v49 }
 0x120   :  { %v272_v52 = vpop.permute.xlu1 %271  ;;  %v127_v54 = vpop.permute.xlu0 %126 }
 0x121   :  { %v277_v53 = vsel %vm107_vm1, %v272_v52, %v574_v17  ;;  %v131_v55 = vsel %vm107_vm1, %v127_v54, %v579_v21  ;;  %v352_v52 = vadd.f32 %v348_v38, %v344_v41 }
 0x122   :  { %153 = vrot.lane.b32.xlu1 %v128_v42, %s484_s7  ;;  %155 = vrot.lane.b32.xlu0 %v129_v46, %s484_s7  ;;  %v187_v42 = vsel %vm183_vm2, %v182_v29, %v180_v28 }
 0x123   :  { %v360_v20 = vand.u32 2147483647, %v352_v52 }
 0x124   :  { %v274_v56 = vpop.permute.xlu1 %273 }
 0x125   :  { %v278_v57 = vsel %vm107_vm1, %v274_v56, %v583_v23 }
 0x126   :  { %287 = vrot.lane.b32.xlu1 %v277_v53, %s483_s6  ;;  %299 = vrot.lane.b32.xlu0 %v275_v47, %s484_s7  ;;  %v220_v47 = vand.u32 2147483647, %v677_v35 }
 0x12a   :  { %301 = vrot.lane.b32.xlu1 %v276_v50, %s484_s7  ;;  %142 = vrot.lane.b32.xlu0 %v131_v55, %s483_s6 }
 0x12e   :  { %157 = vrot.lane.b32.xlu1 %v130_v51, %s484_s7  ;;  %289 = vrot.lane.b32.xlu0 %v278_v57, %s483_s6  ;;  %v359_v51 = vand.u32 2147483647, %v679_v36 }
 0x132   :  { %303 = vrot.lane.b32.xlu1 %v277_v53, %s484_s7  ;;  %159 = vrot.lane.b32.xlu0 %v131_v55, %s484_s7  ;;  %v190_v53 = vsel %vm177_vm4, 0.0, %v187_v42 }
 0x133   :  { %v209_v7 = vadd.f32 %v190_v53, %v566_v9 }
 0x135   :  { %v213_v27 = vadd.f32 %v209_v7, %v200_v6 }
 0x136   :  { %305 = vrot.lane.b32.xlu1 %v278_v57, %s484_s7  ;;  %v333_v57 = vsel %vm177_vm4, 0.0, %v330_v45 }
 0x188   :  { %v137_v3 = vpop.permute.xlu0 %136 }
 0x189   :  { %v148_v62 = vsel %vm106_vm6, 0.0, %v137_v3 }
 0x18a   :  { %v169_v12 = vadd.f32 %v148_v62, %v539_v37 }
 0x18c   :  { %v139_v10 = vpop.permute.xlu1 %138  ;;  %v284_v11 = vpop.permute.xlu0 %283 }
 0x18d   :  { %v149_v46 = vsel %vm106_vm6, 0.0, %v139_v10  ;;  %v295_v50 = vsel %vm106_vm6, 0.0, %v284_v11  ;;  %v349_v10 = vadd.f32 %v333_v57, %v574_v17  ;;  %v202_v11 = vsel %vm198_vm3, %v197_v49, %v195_v48 }
 0x18e   :  { %v170_v0 = vadd.f32 %v149_v46, %v553_v58  ;;  %v315_v5 = vadd.f32 %v295_v50, %v543_v44  ;;  %v206_v30 = vsel %vm193_vm5, 0.0, %v202_v11  ;;  %v221_v48 = vand.u32 2147483647, %v213_v27 }
 0x18f   :  { %v353_v29 = vadd.f32 %v349_v10, %v340_v16 }
 0x190   :  { %v286_v24 = vpop.permute.xlu1 %285  ;;  %v141_v25 = vpop.permute.xlu0 %140 }
 0x191   :  { %v296_v1 = vsel %vm106_vm6, 0.0, %v286_v24  ;;  %v150_v18 = vsel %vm106_vm6, 0.0, %v141_v25  ;;  %v328_v24 = vsel %vm183_vm2, %v324_v32, %v326_v33  ;;  %v210_v25 = vadd.f32 %v185_v8, %v579_v21 }
 0x192   :  { %v316_v44 = vadd.f32 %v296_v1, %v558_v63  ;;  %v342_v63 = vsel %vm198_vm3, %v338_v61, %v336_v59  ;;  %v171_v31 = vadd.f32 %v150_v18, %v566_v9  ;;  %v350_v32 = vadd.f32 %v328_v24, %v583_v23 }
 0x193   :  { %v219_v9 = vand.u32 2147483647, %v688_v43  ;;  %v361_v49 = vand.u32 2147483647, %v353_v29  ;;  %v214_v50 = vadd.f32 %v210_v25, %v206_v30 }
 0x194   :  { %v154_v39 = vpop.permute.xlu1 %153  ;;  %v156_v40 = vpop.permute.xlu0 %155 }
 0x195   :  { %v166_v54 = vsel %vm152_vm7, 0.0, %v156_v40  ;;  %v165_v3 = vsel %vm152_vm7, 0.0, %v154_v39  ;;  %v346_v40 = vsel %vm193_vm5, 0.0, %v342_v63  ;;  %v222_v6 = vand.u32 2147483647, %v214_v50 }
 0x196   :  { %v174_v58 = vadd.f32 %v170_v0, %v166_v54  ;;  %v173_v26 = vadd.f32 %v169_v12, %v165_v3  ;;  %v354_v57 = vadd.f32 %v350_v32, %v346_v40 }
 0x198   :  { %v288_v55 = vpop.permute.xlu1 %287  ;;  %v300_v56 = vpop.permute.xlu0 %299  ;;  %v216_v28 = vand.u32 2147483647, %v174_v58  ;;  %v215_v41 = vand.u32 2147483647, %v173_v26  ;;  %v362_v7 = vand.u32 2147483647, %v354_v57 }
 0x199   :  { %v311_v4 = vsel %vm152_vm7, 0.0, %v300_v56  ;;  %v297_v33 = vsel %vm106_vm6, 0.0, %v288_v55 }
 0x19a   :  { %v319_v13 = vadd.f32 %v315_v5, %v311_v4  ;;  %v224_v46 = vadd.f32 %v220_v47, %v216_v28  ;;  %v317_v52 = vadd.f32 %v297_v33, %v574_v17  ;;  %v223_v61 = vadd.f32 %v219_v9, %v215_v41 }
 0x19c   :  { %v302_v14 = vpop.permute.xlu1 %301  ;;  %v143_v15 = vpop.permute.xlu0 %142  ;;  %v355_v34 = vand.u32 2147483647, %v319_v13 }
 0x19d   :  { %v312_v22 = vsel %vm152_vm7, 0.0, %v302_v14  ;;  %v151_v60 = vsel %vm106_vm6, 0.0, %v143_v15 }
 0x19e   :  { %v320_v37 = vadd.f32 %v316_v44, %v312_v22  ;;  %v363_v53 = vadd.f32 %v359_v51, %v355_v34  ;;  %v172_v54 = vadd.f32 %v151_v60, %v579_v21 }
 0x1a0   :  { %v356_v35 = vand.u32 2147483647, %v320_v37  ;;  %v158_v36 = vpop.permute.xlu1 %157  ;;  %v290_v38 = vpop.permute.xlu0 %289  ;;  %v367_v51 = vsub.f32 %v223_v61, %v363_v53 }
 0x1a1   :  { %v167_v39 = vsel %vm152_vm7, 0.0, %v158_v36  ;;  %v298_v2 = vsel %vm106_vm6, 0.0, %v290_v38 }
 0x1a2   :  { %v364_v42 = vadd.f32 %v360_v20, %v356_v35  ;;  %v175_v45 = vadd.f32 %v171_v31, %v167_v39  ;;  %v318_v21 = vadd.f32 %v298_v2, %v583_v23  ;;  %v371_v12 = vmul.f32 %v367_v51, %v367_v51 }
 0x1a4   :  { %v304_v55 = vpop.permute.xlu1 %303  ;;  %v160_v56 = vpop.permute.xlu0 %159  ;;  %v368_v59 = vsub.f32 %v224_v46, %v364_v42  ;;  %v217_v62 = vand.u32 2147483647, %v175_v45  ;;  %v375_v20 = vsel %vm72_vm0, %v371_v12, 0.0 }
 0x1a5   :  { %v313_v43 = vsel %vm152_vm7, 0.0, %v304_v55  ;;  %v168_v47 = vsel %vm152_vm7, 0.0, %v160_v56 }
 0x1a6   :  { %v321_v0 = vadd.f32 %v317_v52, %v313_v43  ;;  %v176_v17 = vadd.f32 %v172_v54, %v168_v47  ;;  %v372_v5 = vmul.f32 %v368_v59, %v368_v59  ;;  %v225_v3 = vadd.f32 %v221_v48, %v217_v62 }
 0x1a8   :  { %v357_v1 = vand.u32 2147483647, %v321_v0  ;;  %v306_v4 = vpop.permute.xlu1 %305  ;;  %v218_v10 = vand.u32 2147483647, %v176_v17  ;;  %v376_v23 = vsel %vm72_vm0, %v372_v5, 0.0 }
 0x1a9   :  { %v314_v8 = vsel %vm152_vm7, 0.0, %v306_v4  ;;  %v377_v24 = vadd.f32 %v376_v23, %v375_v20 }
 0x1aa   :  { %v365_v58 = vadd.f32 %v361_v49, %v357_v1  ;;  %v322_v11 = vadd.f32 %v318_v21, %v314_v8  ;;  %v226_v14 = vadd.f32 %v222_v6, %v218_v10 }
 0x1ac   :  { %v369_v44 = vsub.f32 %v225_v3, %v365_v58  ;;  %v358_v13 = vand.u32 2147483647, %v322_v11 }
 0x1ae   :  { %v366_v15 = vadd.f32 %v362_v7, %v358_v13  ;;  %v373_v16 = vmul.f32 %v369_v44, %v369_v44 }
 0x1b0   :  { %v370_v18 = vsub.f32 %v226_v14, %v366_v15  ;;  %v378_v22 = vsel %vm72_vm0, %v373_v16, 0.0 }
 0x1b1   :  { %v379_v26 = vadd.f32 %v378_v22, %v377_v24 }
 0x1b2   :  { %v374_v19 = vmul.f32 %v370_v18, %v370_v18 }
 0x1b4   :  { %v380_v37 = vsel %vm72_vm0, %v374_v19, 0.0 }
 0x1b5   :  { %v381_v27 = vadd.f32 %v380_v37, %v379_v26 }
 0x1b7   :  { %382 = vadd.xlane.f32.xlu0 %v381_v27 }
 0x244   :  { %v383_v63 = vpop.xlane.xlu0 %382 }
 0x245   :  { %v384_v28 = vrot.slane %v383_v63, 4 }
 0x247   :  { %v385_v29 = vadd.f32 %v384_v28, %v383_v63 }
 0x249   :  { %v386_v30 = vrot.slane %v385_v29, 2 }
 0x24b   :  { %v387_v25 = vadd.f32 %v386_v30, %v385_v29 }
 0x24d   :  { %v388_v31 = vrot.slane %v387_v25, 1 }
 0x24f   :  { %v389_v34 = vadd.f32 %v388_v31, %v387_v25 }
 0x251   :  { %408 = vpush %v389_v34 }
 0x282   :  { %s409_s8 = spop %408 }
 0x283   :  { %392 = sst [smem:[#allocation7]] %s409_s8 }
 0x284   :  { %471 = shalt.err (!%p468_p4)
}
 0x285   :  { %s485_s16 = smov [#allocation7]  }
 0x286   :  { %400 = dma.smem_to_hbm %s485_s16, 16, %s781_s2, [#allocation4]  }
 0x287   :  { %476 = dma.done.wait [#allocation4], 16  }
 0x288   :  { %477 = vsyncadd [#allocation4], 4294967280 }
 0x289   :  { %404 = sfence }
 0x28a   :  { %405 = vsyncpa [#allocation3], 1 }
 0x28b   :  { %406 = vsyncpa [#allocation6], 1 }
 0x28c   :  { %407 = vsyncpa [#allocation4], 1 }

</bundles_post_ra>
